<compile_context>
chip_gen: v7x
topology: tpu7x:2x2x1
jax: 0.10.0
libtpu: 0.0.40
codegen_flags: <defaults>
</compile_context>

<pallas_src>
import jax
import jax.numpy as jnp
from jax.experimental import pallas as pl
from jax.experimental.pallas import tpu as pltpu


def skip_gram_kernel(ids_ref, emb_ref, w_ref, b_ref, out_ref, x_ref, m_ref, l_ref):
    j = pl.program_id(0)
    n_tiles = pl.num_programs(0)
    B = x_ref.shape[0]
    V = emb_ref.shape[0]
    tV = w_ref.shape[1]

    @pl.when(j == 0)
    def _init():
        # Direct gather: B unrolled dynamic-slice row reads of the embedding
        # table, indexed by SMEM scalars (no one-hot matmul, no iota/compare).
        for i in range(B):
            tok = jnp.clip(ids_ref[i], 0, V - 1)  # guard against OOB VMEM read
            x_ref[pl.ds(i, 1), :] = emb_ref[pl.ds(tok, 1), :]
        m_ref[...] = jnp.full_like(m_ref, -jnp.inf)
        l_ref[...] = jnp.zeros_like(l_ref)

    # Logits tile: x @ W_tile with the bias folded into the epilogue add.
    logits = b_ref[...] + jnp.dot(
        x_ref[...], w_ref[...], preferred_element_type=jnp.float32
    )  # [B, tV]

    # Online log-sum-exp accumulation over vocab tiles (numerically stable).
    m_prev = m_ref[...]
    m_new = jnp.maximum(m_prev, jnp.max(logits, axis=1, keepdims=True))
    l_ref[...] = (l_ref[...] * jnp.exp(m_prev - m_new)
                  + jnp.sum(jnp.exp(logits - m_new), axis=1, keepdims=True))
    m_ref[...] = m_new

    # Stash the unnormalized logits tile into the resident full-width output.
    start = pl.multiple_of(j * tV, tV)
    out_ref[:, pl.ds(start, tV)] = logits

    @pl.when(j == n_tiles - 1)
    def _finalize():
        lse = m_ref[...] + jnp.log(l_ref[...])          # [B, 1]
        out_ref[...] = out_ref[...] - lse               # log_softmax over vocab


def skip_gram_forward(ids, emb_table, weight, bias, *, tile_v=128):
    """ids: int32 [B]; emb_table: [V, E]; weight: [V, E] (PyTorch nn.Linear
    layout); bias: [V]. Returns log-probs [B, V] (log_softmax over dim=1)."""
    B = ids.shape[0]
    V, E = emb_table.shape
    tile_v = min(tile_v, V)
    assert V % tile_v == 0, "vocab size must be divisible by the vocab tile"

    ids = ids.astype(jnp.int32)
    emb = emb_table.astype(jnp.float32)
    # Present the weight as [E, V] so the kernel does x @ W (lane-dense vocab).
    # TODO(synk): for large vocab on v6e/v7x, store w_t / emb in bfloat16 to
    # halve DMA bytes and double MXU throughput (accumulation stays f32).
    w_t = weight.astype(jnp.float32).T               # [E, V]
    b2d = bias.reshape(1, V).astype(jnp.float32)     # [1, V]

    grid = (V // tile_v,)
    grid_spec = pltpu.PrefetchScalarGridSpec(
        num_scalar_prefetch=1,                       # ids -> SMEM scalars
        grid=grid,
        in_specs=[
            # Embedding table: constant block index -> DMA'd once, resident.
            pl.BlockSpec((V, E), lambda j, ids_ref: (0, 0)),
            # Linear weight / bias: streamed vocab tiles (double-buffered).
            pl.BlockSpec((E, tile_v), lambda j, ids_ref: (0, j)),
            pl.BlockSpec((1, tile_v), lambda j, ids_ref: (0, j)),
        ],
        # Full-width output stays resident in VMEM across all vocab tiles so
        # the last step can normalize it with the accumulated LSE.
        out_specs=pl.BlockSpec((B, V), lambda j, ids_ref: (0, 0)),
        scratch_shapes=[
            pltpu.VMEM((B, E), jnp.float32),   # gathered embeddings x
            pltpu.VMEM((B, 1), jnp.float32),   # running max m
            pltpu.VMEM((B, 1), jnp.float32),   # running sum(exp) l
        ],
    )
    return pl.pallas_call(
        skip_gram_kernel,
        out_shape=jax.ShapeDtypeStruct((B, V), jnp.float32),
        grid_spec=grid_spec,
        compiler_params=pltpu.CompilerParams(
            dimension_semantics=("arbitrary",)),  # LSE carry across vocab tiles
    )(ids, emb, w_t, b2d)


def reference_forward(ids, emb_table, weight, bias):
    x = emb_table[ids]                         # embedding lookup [B, E]
    logits = x @ weight.T + bias[None, :]      # linear [B, V]
    return jax.nn.log_softmax(logits, axis=1)


if __name__ == "__main__":
    # Small, module-consistent shapes.
    vocab_size = 256
    embedding_dim = 128
    batch = 8

    key = jax.random.PRNGKey(0)
    k_emb, k_w, k_b, k_ids = jax.random.split(key, 4)

    # nn.Embedding init ~ N(0, 1); nn.Linear init ~ U(-1/sqrt(E), 1/sqrt(E)).
    emb_table = jax.random.normal(k_emb, (vocab_size, embedding_dim), jnp.float32)
    bound = 1.0 / (embedding_dim ** 0.5)
    weight = jax.random.uniform(k_w, (vocab_size, embedding_dim), jnp.float32,
                                minval=-bound, maxval=bound)   # PyTorch [V, E]
    bias = jax.random.uniform(k_b, (vocab_size,), jnp.float32,
                              minval=-bound, maxval=bound)

    ids = jax.random.randint(k_ids, (batch,), 0, vocab_size, dtype=jnp.int32)

    out = skip_gram_forward(ids, emb_table, weight, bias)
    out = jax.block_until_ready(out)

    ref = reference_forward(ids, emb_table, weight, bias)
    assert out.shape == (batch, vocab_size)
    assert jnp.allclose(out, ref, atol=1e-4, rtol=1e-4)

    print("KERNEL_OK")
</pallas_src>

<mosaic_0001>
module attributes {stable_mosaic.version = 11 : i64} {
  func.func @skip_gram_kernel(%arg0: i32, %arg1: memref<8xi32, #tpu.memory_space<smem>>, %arg2: memref<256x128xf32, #tpu.memory_space<vmem>>, %arg3: memref<128x128xf32, #tpu.memory_space<vmem>>, %arg4: memref<1x128xf32, #tpu.memory_space<vmem>>, %arg5: memref<8x256xf32, #tpu.memory_space<vmem>>, %arg6: memref<8x128xf32, #tpu.memory_space<vmem>>, %arg7: memref<8x1xf32, #tpu.memory_space<vmem>>, %arg8: memref<8x1xf32, #tpu.memory_space<vmem>>) attributes {dimension_semantics = [#tpu.dimension_semantics<arbitrary>], iteration_bounds = array<i64: 2>, scalar_prefetch = 1 : i64, scratch_operands = 3 : i64, tpu.core_type = #tpu.core_type<tc>, window_params = [{pipeline_mode = #tpu.pipeline_mode<synchronous>, transform_indices = @transform_0, window_bounds = array<i64: 256, 128>}, {transform_indices = @transform_1, window_bounds = array<i64: 128, 128>}, {transform_indices = @transform_2, window_bounds = array<i64: 1, 128>}, {pipeline_mode = #tpu.pipeline_mode<synchronous>, transform_indices = @transform_3, window_bounds = array<i64: 8, 256>}]} {
    %c0_i32 = arith.constant 0 : i32
    %0 = arith.cmpi eq, %arg0, %c0_i32 : i32
    %1 = arith.extui %0 : i1 to i32
    %c0_i32_0 = arith.constant 0 : i32
    %2 = arith.cmpi ne, %1, %c0_i32_0 : i32
    scf.if %2 {
      %c0_18 = arith.constant 0 : index
      %32 = memref.load %arg1[%c0_18] : memref<8xi32, #tpu.memory_space<smem>>
      %c0_i32_19 = arith.constant 0 : i32
      %c255_i32 = arith.constant 255 : i32
      %33 = arith.maxsi %c0_i32_19, %32 : i32
      %34 = arith.minsi %c255_i32, %33 : i32
      %35 = arith.index_cast %34 : i32 to index
      %c0_20 = arith.constant 0 : index
      %36 = vector.load %arg2[%35, %c0_20] : memref<256x128xf32, #tpu.memory_space<vmem>>, vector<1x128xf32>
      %c0_21 = arith.constant 0 : index
      %c0_22 = arith.constant 0 : index
      %37 = vector.load %arg6[%c0_21, %c0_22] : memref<8x128xf32, #tpu.memory_space<vmem>>, vector<1x128xf32>
      tpu.vector_store %arg6[%c0_21, %c0_22], %36 {strides = array<i32>} : memref<8x128xf32, #tpu.memory_space<vmem>>, vector<1x128xf32>,
      %c1 = arith.constant 1 : index
      %38 = memref.load %arg1[%c1] : memref<8xi32, #tpu.memory_space<smem>>
      %c0_i32_23 = arith.constant 0 : i32
      %c255_i32_24 = arith.constant 255 : i32
      %39 = arith.maxsi %c0_i32_23, %38 : i32
      %40 = arith.minsi %c255_i32_24, %39 : i32
      %41 = arith.index_cast %40 : i32 to index
      %c0_25 = arith.constant 0 : index
      %42 = vector.load %arg2[%41, %c0_25] : memref<256x128xf32, #tpu.memory_space<vmem>>, vector<1x128xf32>
      %c1_26 = arith.constant 1 : index
      %c0_27 = arith.constant 0 : index
      %43 = vector.load %arg6[%c1_26, %c0_27] : memref<8x128xf32, #tpu.memory_space<vmem>>, vector<1x128xf32>
      tpu.vector_store %arg6[%c1_26, %c0_27], %42 {strides = array<i32>} : memref<8x128xf32, #tpu.memory_space<vmem>>, vector<1x128xf32>,
      %c2 = arith.constant 2 : index
      %44 = memref.load %arg1[%c2] : memref<8xi32, #tpu.memory_space<smem>>
      %c0_i32_28 = arith.constant 0 : i32
      %c255_i32_29 = arith.constant 255 : i32
      %45 = arith.maxsi %c0_i32_28, %44 : i32
      %46 = arith.minsi %c255_i32_29, %45 : i32
      %47 = arith.index_cast %46 : i32 to index
      %c0_30 = arith.constant 0 : index
      %48 = vector.load %arg2[%47, %c0_30] : memref<256x128xf32, #tpu.memory_space<vmem>>, vector<1x128xf32>
      %c2_31 = arith.constant 2 : index
      %c0_32 = arith.constant 0 : index
      %49 = vector.load %arg6[%c2_31, %c0_32] : memref<8x128xf32, #tpu.memory_space<vmem>>, vector<1x128xf32>
      tpu.vector_store %arg6[%c2_31, %c0_32], %48 {strides = array<i32>} : memref<8x128xf32, #tpu.memory_space<vmem>>, vector<1x128xf32>,
      %c3 = arith.constant 3 : index
      %50 = memref.load %arg1[%c3] : memref<8xi32, #tpu.memory_space<smem>>
      %c0_i32_33 = arith.constant 0 : i32
      %c255_i32_34 = arith.constant 255 : i32
      %51 = arith.maxsi %c0_i32_33, %50 : i32
      %52 = arith.minsi %c255_i32_34, %51 : i32
      %53 = arith.index_cast %52 : i32 to index
      %c0_35 = arith.constant 0 : index
      %54 = vector.load %arg2[%53, %c0_35] : memref<256x128xf32, #tpu.memory_space<vmem>>, vector<1x128xf32>
      %c3_36 = arith.constant 3 : index
      %c0_37 = arith.constant 0 : index
      %55 = vector.load %arg6[%c3_36, %c0_37] : memref<8x128xf32, #tpu.memory_space<vmem>>, vector<1x128xf32>
      tpu.vector_store %arg6[%c3_36, %c0_37], %54 {strides = array<i32>} : memref<8x128xf32, #tpu.memory_space<vmem>>, vector<1x128xf32>,
      %c4 = arith.constant 4 : index
      %56 = memref.load %arg1[%c4] : memref<8xi32, #tpu.memory_space<smem>>
      %c0_i32_38 = arith.constant 0 : i32
      %c255_i32_39 = arith.constant 255 : i32
      %57 = arith.maxsi %c0_i32_38, %56 : i32
      %58 = arith.minsi %c255_i32_39, %57 : i32
      %59 = arith.index_cast %58 : i32 to index
      %c0_40 = arith.constant 0 : index
      %60 = vector.load %arg2[%59, %c0_40] : memref<256x128xf32, #tpu.memory_space<vmem>>, vector<1x128xf32>
      %c4_41 = arith.constant 4 : index
      %c0_42 = arith.constant 0 : index
      %61 = vector.load %arg6[%c4_41, %c0_42] : memref<8x128xf32, #tpu.memory_space<vmem>>, vector<1x128xf32>
      tpu.vector_store %arg6[%c4_41, %c0_42], %60 {strides = array<i32>} : memref<8x128xf32, #tpu.memory_space<vmem>>, vector<1x128xf32>,
      %c5 = arith.constant 5 : index
      %62 = memref.load %arg1[%c5] : memref<8xi32, #tpu.memory_space<smem>>
      %c0_i32_43 = arith.constant 0 : i32
      %c255_i32_44 = arith.constant 255 : i32
      %63 = arith.maxsi %c0_i32_43, %62 : i32
      %64 = arith.minsi %c255_i32_44, %63 : i32
      %65 = arith.index_cast %64 : i32 to index
      %c0_45 = arith.constant 0 : index
      %66 = vector.load %arg2[%65, %c0_45] : memref<256x128xf32, #tpu.memory_space<vmem>>, vector<1x128xf32>
      %c5_46 = arith.constant 5 : index
      %c0_47 = arith.constant 0 : index
      %67 = vector.load %arg6[%c5_46, %c0_47] : memref<8x128xf32, #tpu.memory_space<vmem>>, vector<1x128xf32>
      tpu.vector_store %arg6[%c5_46, %c0_47], %66 {strides = array<i32>} : memref<8x128xf32, #tpu.memory_space<vmem>>, vector<1x128xf32>,
      %c6 = arith.constant 6 : index
      %68 = memref.load %arg1[%c6] : memref<8xi32, #tpu.memory_space<smem>>
      %c0_i32_48 = arith.constant 0 : i32
      %c255_i32_49 = arith.constant 255 : i32
      %69 = arith.maxsi %c0_i32_48, %68 : i32
      %70 = arith.minsi %c255_i32_49, %69 : i32
      %71 = arith.index_cast %70 : i32 to index
      %c0_50 = arith.constant 0 : index
      %72 = vector.load %arg2[%71, %c0_50] : memref<256x128xf32, #tpu.memory_space<vmem>>, vector<1x128xf32>
      %c6_51 = arith.constant 6 : index
      %c0_52 = arith.constant 0 : index
      %73 = vector.load %arg6[%c6_51, %c0_52] : memref<8x128xf32, #tpu.memory_space<vmem>>, vector<1x128xf32>
      tpu.vector_store %arg6[%c6_51, %c0_52], %72 {strides = array<i32>} : memref<8x128xf32, #tpu.memory_space<vmem>>, vector<1x128xf32>,
      %c7 = arith.constant 7 : index
      %74 = memref.load %arg1[%c7] : memref<8xi32, #tpu.memory_space<smem>>
      %c0_i32_53 = arith.constant 0 : i32
      %c255_i32_54 = arith.constant 255 : i32
      %75 = arith.maxsi %c0_i32_53, %74 : i32
      %76 = arith.minsi %c255_i32_54, %75 : i32
      %77 = arith.index_cast %76 : i32 to index
      %c0_55 = arith.constant 0 : index
      %78 = vector.load %arg2[%77, %c0_55] : memref<256x128xf32, #tpu.memory_space<vmem>>, vector<1x128xf32>
      %c7_56 = arith.constant 7 : index
      %c0_57 = arith.constant 0 : index
      %79 = vector.load %arg6[%c7_56, %c0_57] : memref<8x128xf32, #tpu.memory_space<vmem>>, vector<1x128xf32>
      tpu.vector_store %arg6[%c7_56, %c0_57], %78 {strides = array<i32>} : memref<8x128xf32, #tpu.memory_space<vmem>>, vector<1x128xf32>,
      %cst_58 = arith.constant 0xFF800000 : f32
      %80 = vector.broadcast %cst_58 : f32 to vector<8x1xf32>
      %c0_59 = arith.constant 0 : index
      %c0_60 = arith.constant 0 : index
      %81 = vector.load %arg7[%c0_59, %c0_60] : memref<8x1xf32, #tpu.memory_space<vmem>>, vector<8x1xf32>
      tpu.vector_store %arg7[%c0_59, %c0_60], %80 {strides = array<i32>} : memref<8x1xf32, #tpu.memory_space<vmem>>, vector<8x1xf32>,
      %cst_61 = arith.constant 0.000000e+00 : f32
      %82 = vector.broadcast %cst_61 : f32 to vector<8x1xf32>
      %c0_62 = arith.constant 0 : index
      %c0_63 = arith.constant 0 : index
      %83 = vector.load %arg8[%c0_62, %c0_63] : memref<8x1xf32, #tpu.memory_space<vmem>>, vector<8x1xf32>
      tpu.vector_store %arg8[%c0_62, %c0_63], %82 {strides = array<i32>} : memref<8x1xf32, #tpu.memory_space<vmem>>, vector<8x1xf32>,
    } else {
    }
    %c0 = arith.constant 0 : index
    %c0_1 = arith.constant 0 : index
    %3 = vector.load %arg4[%c0, %c0_1] : memref<1x128xf32, #tpu.memory_space<vmem>>, vector<1x128xf32>
    %c0_2 = arith.constant 0 : index
    %c0_3 = arith.constant 0 : index
    %4 = vector.load %arg6[%c0_2, %c0_3] : memref<8x128xf32, #tpu.memory_space<vmem>>, vector<8x128xf32>
    %c0_4 = arith.constant 0 : index
    %c0_5 = arith.constant 0 : index
    %5 = vector.load %arg3[%c0_4, %c0_5] : memref<128x128xf32, #tpu.memory_space<vmem>>, vector<128x128xf32>
    %cst = arith.constant dense<0.000000e+00> : vector<8x128xf32>
    %6 = tpu.matmul %4, %5, %cst {dimension_numbers = #tpu.dot_dimension_numbers<[1], [0], [0], [1], [0, 0, 1, 1], [], []>} : vector<8x128xf32>, vector<128x128xf32>, vector<8x128xf32> -> vector<8x128xf32>
    %7 = vector.broadcast %3 : vector<1x128xf32> to vector<8x128xf32>
    %8 = arith.addf %7, %6 : vector<8x128xf32>
    %c0_6 = arith.constant 0 : index
    %c0_7 = arith.constant 0 : index
    %9 = vector.load %arg7[%c0_6, %c0_7] : memref<8x1xf32, #tpu.memory_space<vmem>>, vector<8x1xf32>
    %cst_8 = arith.constant dense<0xFF800000> : vector<8xf32>
    %10 = vector.multi_reduction <maximumf>, %8, %cst_8 [1] : vector<8x128xf32> to vector<8xf32>
    %11 = vector.shape_cast %10 : vector<8xf32> to vector<8x1xf32>
    %12 = arith.maximumf %9, %11 : vector<8x1xf32>
    %c0_9 = arith.constant 0 : index
    %c0_10 = arith.constant 0 : index
    %13 = vector.load %arg8[%c0_9, %c0_10] : memref<8x1xf32, #tpu.memory_space<vmem>>, vector<8x1xf32>
    %14 = arith.subf %9, %12 : vector<8x1xf32>
    %15 = math.exp %14 : vector<8x1xf32>
    %16 = arith.mulf %13, %15 : vector<8x1xf32>
    %17 = vector.broadcast %12 : vector<8x1xf32> to vector<8x128xf32>
    %18 = arith.subf %8, %17 : vector<8x128xf32>
    %19 = math.exp %18 : vector<8x128xf32>
    %cst_11 = arith.constant dense<0.000000e+00> : vector<8xf32>
    %20 = vector.multi_reduction <add>, %19, %cst_11 [1] : vector<8x128xf32> to vector<8xf32>
    %21 = vector.shape_cast %20 : vector<8xf32> to vector<8x1xf32>
    %22 = arith.addf %16, %21 : vector<8x1xf32>
    %c0_12 = arith.constant 0 : index
    %c0_13 = arith.constant 0 : index
    %23 = vector.load %arg8[%c0_12, %c0_13] : memref<8x1xf32, #tpu.memory_space<vmem>>, vector<8x1xf32>
    tpu.vector_store %arg8[%c0_12, %c0_13], %22 {strides = array<i32>} : memref<8x1xf32, #tpu.memory_space<vmem>>, vector<8x1xf32>,
    %c0_14 = arith.constant 0 : index
    %c0_15 = arith.constant 0 : index
    %24 = vector.load %arg7[%c0_14, %c0_15] : memref<8x1xf32, #tpu.memory_space<vmem>>, vector<8x1xf32>
    tpu.vector_store %arg7[%c0_14, %c0_15], %12 {strides = array<i32>} : memref<8x1xf32, #tpu.memory_space<vmem>>, vector<8x1xf32>,
    %c128_i32 = arith.constant 128 : i32
    %25 = arith.muli %arg0, %c128_i32 : i32
    %26 = tpu.assume_multiple %25, 128 : i32
    %c0_16 = arith.constant 0 : index
    %27 = arith.index_cast %26 : i32 to index
    %28 = vector.load %arg5[%c0_16, %27] : memref<8x256xf32, #tpu.memory_space<vmem>>, vector<8x128xf32>
    tpu.vector_store %arg5[%c0_16, %27], %8 {strides = array<i32>} : memref<8x256xf32, #tpu.memory_space<vmem>>, vector<8x128xf32>,
    %c1_i32 = arith.constant 1 : i32
    %29 = arith.cmpi eq, %arg0, %c1_i32 : i32
    %30 = arith.extui %29 : i1 to i32
    %c0_i32_17 = arith.constant 0 : i32
    %31 = arith.cmpi ne, %30, %c0_i32_17 : i32
    scf.if %31 {
      %c0_18 = arith.constant 0 : index
      %c0_19 = arith.constant 0 : index
      %32 = vector.load %arg7[%c0_18, %c0_19] : memref<8x1xf32, #tpu.memory_space<vmem>>, vector<8x1xf32>
      %c0_20 = arith.constant 0 : index
      %c0_21 = arith.constant 0 : index
      %33 = vector.load %arg8[%c0_20, %c0_21] : memref<8x1xf32, #tpu.memory_space<vmem>>, vector<8x1xf32>
      %34 = math.log %33 : vector<8x1xf32>
      %35 = arith.addf %32, %34 : vector<8x1xf32>
      %c0_22 = arith.constant 0 : index
      %c0_23 = arith.constant 0 : index
      %36 = vector.load %arg5[%c0_22, %c0_23] : memref<8x256xf32, #tpu.memory_space<vmem>>, vector<8x256xf32>
      %37 = vector.broadcast %35 : vector<8x1xf32> to vector<8x256xf32>
      %38 = arith.subf %36, %37 : vector<8x256xf32>
      %c0_24 = arith.constant 0 : index
      %c0_25 = arith.constant 0 : index
      %39 = vector.load %arg5[%c0_24, %c0_25] : memref<8x256xf32, #tpu.memory_space<vmem>>, vector<8x256xf32>
      tpu.vector_store %arg5[%c0_24, %c0_25], %38 {strides = array<i32>} : memref<8x256xf32, #tpu.memory_space<vmem>>, vector<8x256xf32>,
    } else {
    }
    return
  }
  func.func @transform_0(%arg0: i32, %arg1: memref<8xi32, #tpu.memory_space<smem>>) -> (i32, i32) {
    %c0_i32 = arith.constant 0 : i32
    %c0_i32_0 = arith.constant 0 : i32
    %c0_i32_1 = arith.constant 0 : i32
    return %c0_i32, %c0_i32_0 : i32, i32
  }
  func.func @transform_1(%arg0: i32, %arg1: memref<8xi32, #tpu.memory_space<smem>>) -> (i32, i32) {
    %c0_i32 = arith.constant 0 : i32
    %c0_i32_0 = arith.constant 0 : i32
    return %c0_i32, %arg0 : i32, i32
  }
  func.func @transform_2(%arg0: i32, %arg1: memref<8xi32, #tpu.memory_space<smem>>) -> (i32, i32) {
    %c0_i32 = arith.constant 0 : i32
    %c0_i32_0 = arith.constant 0 : i32
    return %c0_i32, %arg0 : i32, i32
  }
  func.func @transform_3(%arg0: i32, %arg1: memref<8xi32, #tpu.memory_space<smem>>) -> (i32, i32) {
    %c0_i32 = arith.constant 0 : i32
    %c0_i32_0 = arith.constant 0 : i32
    %c0_i32_1 = arith.constant 0 : i32
    return %c0_i32, %c0_i32_0 : i32, i32
  }
}

</mosaic_0001>

<bundles_post_ra>
// kernel: tpu_custom_call.1
= control target key start
LH: loop header
LB: loop body
LE: loop exit
PB: predicated region body
PF: predicated region fallthrough
CT: control target
= control target key end

     0   :  { %s1171_s0 = inlined_call_operand.hbm [shape: s32[8], index: 0, kind: input, shape index: {}]   ;;  %s1172_s1 = inlined_call_operand.hbm [shape: f32[256,128], index: 1, kind: input, shape index: {}]   ;;  %s1173_s2 = inlined_call_operand.hbm [shape: f32[128,256], index: 2, kind: input, shape index: {}]   ;;  %s1174_s3 = inlined_call_operand.vmem [shape: f32[1,256], index: 3, kind: input, shape index: {}]   ;;  %s1175_s4 = inlined_call_operand.hbm [shape: f32[8,256], index: 4, kind: output, shape index: {}]  }
   0x1   :  { %s746_s17 = scalar_lea.hbm %s1171_s0, 16 }
   0x2   :  { %p747_p0 = scmp.ne.s32.totalorder %s1171_s0, %s746_s17  ;;  %p750_p1 = scmp.lt.u32.totalorder %s746_s17, %s1171_s0 }
   0x4   :  { %p752_p2 = pnand %p750_p1, %p747_p0 }
   0x6   :  { %755 = shalt.err (!%p752_p2)  }
   0x7   :  { %s886_s22 = smov [#allocation6]  }
   0x8   :  { %10 = dma.hbm_to_smem %s1171_s0, 16, %s886_s22, [#allocation5] }
   0x9   :  { %856 = dma.done.wait [#allocation5], 16 }
   0xa   :  { %857 = vsyncadd [#allocation5], 4294967280 }
   0xb   :  { %12 = sfence }
   0xc   :  { %13 = vsyncpa [#allocation8], 0 }
   0xd   :  { %14 = vsyncpa [#allocation11], 0 }
   0xe   :  { %16 = vsyncpa [#allocation11 + $0x1], 0 }
   0xf   :  { %17 = vsyncpa [#allocation9], 0  ;;  %s937_s25 = smov 0   ;;  %s939_s26 = smov 0  }
  0x10   :  { %s941_s27 = smov 0   ;;  %s943_s28 = smov 0  }
  0x11 LB: > { %s956_s0 = sadd.s32 4294967295, %s884_s28   ;;  %s959_s29 = sadd.s32 1, %s884_s28   ;;  %s884_s28 = sphi %s943_s28, %s1194_s28   ;;  %s880_s27 = sphi %s941_s27, %s1193_s27   ;;  %s876_s26 = sphi %s939_s26, %s1192_s26   ;;  %s872_s25 = sphi %s937_s25, %s1191_s25  }
  0x12   : > { %s48_s30 = ssub.s32 %s884_s28, %s959_s29  ;;  %s51_s5 = sadd.s32 1, %s880_s27 }
  0x13   : > { %p49_p3 = scmp.eq.s32.totalorder %s48_s30, 0  ;;  %p58_p4 = scmp.ne.s32.totalorder %s880_s27, %s876_s26 }
  0x14   : > { %p59_p5 = scmp.eq.s32.totalorder %s884_s28, 0  ;;  %p64_p6 = scmp.ne.s32.totalorder %s876_s26, %s872_s25 }
  0x15   : > { %s969_s6 = scalar_select %p49_p3, %s880_s27, %s51_s5  }
  0x16   : > { %p971_p7 = por %p59_p5, %p58_p4  ;;  %p1176_p8 = scmp.eq.s32.totalorder %s956_s0, 0 }
  0x17   : > { %p514_p9 = scmp.ge.s32.totalorder %s884_s28, 1  ;;  %p122_p10 = scmp.lt.s32.totalorder %s884_s28, 3 }
  0x18   : > { %p980_p11 = por %p1176_p8, %p64_p6  ;;  %s887_s10 = smov [#allocation7]  }
  0x19   : > { %p985_p13 = pnand %p514_p9, %p122_p10  ;;  %s134_s11 = sshll.u32 %s887_s10, 4  ;;  %s135_s11 = int_to_ptr.vmem [resolvable:$true] %s134_s11 }
  0x1a   : > { %s1181_s8 = scalar_select %p980_p11, 1, 0 }
  0x1b   : > { %s1182_s9 = scalar_select %p985_p13, 1, 0 }
  0x1c   : > { %p680_p0 = pneg %p985_p13  ;;  %p689_p2 = scmp.lt.s32.totalorder %s884_s28, 2 }
  0x1d   : > { %s148_s13 = sand.u32 1, %s880_s27   ;;  %s518_s14 = sshll.u32 %s884_s28, 7 }
  0x1e   : > { %p993_p1 = pnand %p680_p0, %p1176_p8  ;;  %p1002_p3 = pnand %p689_p2, %p971_p7 }
  0x1f   : > { %s756_s18 = scalar_lea.hbm %s1172_s1, 4096 }
  0x20   : > { %s1184_s15 = scalar_select %p1002_p3, 1, 0 }
  0x21   : > { %p757_p4 = scmp.ne.s32.totalorder %s1172_s1, %s756_s18  ;;  %p758_p5 = pneg %p993_p1 }
  0x22   : > { %p763_p10 = scmp.lt.u32.totalorder %s756_s18, %s1172_s1 }
  0x23   : > { %p759_p6 = pnand %p758_p5, %p757_p4 }
  0x25   : > { %p760_p9 = pneg %p759_p6 }
  0x27   : > { %p765_p7 = pnand %p763_p10, %p760_p9 }
  0x29   : > { %768 = shalt.err (!%p765_p7)
}
  0x2a   : > { %s769_s23 = scalar_lea.vmem %s135_s11, 4096  ;;  %p777_p8 = scmp.lt.s32.totalorder %s135_s11, %s135_s11 }
  0x2b   : > { %p770_p0 = scmp.ne.s32.totalorder %s135_s11, %s769_s23  ;;  %p778_p11 = scmp.lt.s32.totalorder %s769_s23, %s769_s23 }
  0x2d   : > { %p772_p2 = pnand %p770_p0, %p758_p5  ;;  %p779_p13 = por %p778_p11, %p777_p8 }
  0x2f   : > { %p773_p12 = pneg %p772_p2 }
  0x31   : > { %p780_p3 = pnand %p779_p13, %p773_p12 }
  0x33   : > { %783 = shalt.err (!%p780_p3)
}
  0x34   : > { %s888_s24 = smov 128   ;;  %s889_s25 = smov 8  }
  0x35   : > { %683 = dma.hbm_to_vmem [thread:$0]  (!%p993_p1), %s1172_s1, 4096, %s135_s11, [#allocation8], %s888_s24, %s888_s24, %s889_s25  }
  0x36   : > { %s517_s5 = sshll.u32 %s148_s13, 7  ;;  %s1028_s16 = scalar_lea.hbm %s1173_s2, %s518_s14 }
  0x37   : > { %s152_s17 = scalar_lea.vmem [#allocation10], %s517_s5  ;;  %s1032_s12 = scalar_lea.sflag [#allocation11], %s148_s13 }
  0x38   : > { %s158_s18 = sshll.u32 %s152_s17, 4  ;;  %s784_s19 = scalar_lea.hbm %s1028_s16, 2048  ;;  %s1030_s18 = int_to_ptr.vmem [resolvable:$true] %s158_s18 }
  0x39   : > { %p785_p8 = scmp.ne.s32.totalorder %s1028_s16, %s784_s19  ;;  %p1185_p11 = scmp.ne.s32.totalorder %s1184_s15, 0 }
  0x3a   : > { %s789_s20 = scalar_lea.hbm %s1173_s2, 4096  ;;  %p790_p3 = scmp.lt.u32.totalorder %s1028_s16, %s1173_s2 }
  0x3b   : > { %p786_p12 = pneg %p1185_p11  ;;  %p791_p4 = scmp.lt.u32.totalorder %s789_s20, %s784_s19 }
  0x3c   : > { %p793_p6 = scmp.lt.u32.totalorder %s784_s19, %s1028_s16 }
  0x3d   : > { %p787_p13 = pnand %p786_p12, %p785_p8  ;;  %p792_p5 = por %p791_p4, %p790_p3 }
  0x3f   : > { %p788_p1 = pneg %p787_p13  ;;  %p794_p9 = por %p793_p6, %p792_p5 }
  0x41   : > { %p795_p10 = pnand %p794_p9, %p788_p1 }
  0x43   : > { %798 = shalt.err (!%p795_p10)
}
  0x44   : > { %s799_s13 = scalar_lea.vmem %s1030_s18, 2048  ;;  %s890_s23 = smov [#allocation10]  }
  0x45   : > { %p800_p7 = scmp.ne.s32.totalorder %s1030_s18, %s799_s13  ;;  %s804_s28 = sshll.u32 %s890_s23, 4  ;;  %s805_s28 = int_to_ptr.vmem [resolvable:$false] %s804_s28 }
  0x46   : > { %s806_s30 = scalar_lea.vmem %s805_s28, 4096  ;;  %p807_p8 = scmp.lt.s32.totalorder %s1030_s18, %s805_s28 }
  0x47   : > { %p802_p0 = pnand %p800_p7, %p786_p12  ;;  %p808_p13 = scmp.lt.s32.totalorder %s806_s30, %s799_s13 }
  0x49   : > { %p803_p2 = pneg %p802_p0  ;;  %p809_p3 = por %p808_p13, %p807_p8 }
  0x4b   : > { %p810_p4 = pnand %p809_p3, %p803_p2 }
  0x4d   : > { %813 = shalt.err (!%p810_p4)
}
  0x4e   : > { %s891_s5 = smov 256   ;;  %p1186_p12 = scmp.ne.s32.totalorder %s1182_s9, 0 }
  0x4f   : > { %687 = dma.hbm_to_vmem [thread:$0]  (!%p1185_p11), %s1028_s16, 2048, %s1030_s18, %s1032_s12, %s891_s5, %s888_s24, %s889_s25  }
  0x50   : > { %176 = sbr.rel (%p1186_p12) target bundleno = 981 (0x3d5), region = 32  ;;  %p1187_p1 = scmp.eq.s32.totalorder (!%p1186_p12), %s956_s0, 0 }
  0x57   : > { %859 = dma.done.wait (%p1187_p1), [#allocation8], 4096   ;;  %p1188_p5 = pmov %p1187_p1 }
  0x58   : > { %s182_s7 = sand.u32 1, %s876_s26   ;;  %p1189_p6 = scmp.ne.s32.totalorder %s1181_s8, 0 }
  0x59   : > { %861 = vsyncadd (%p1188_p5), [#allocation8], 4294963200  ;;  %s521_s10 = sshll.u32 %s182_s7, 7  ;;  %s183_s15 = scalar_lea.sflag [#allocation11], %s182_s7 }
  0x5a   : > { %s1069_s17 = scalar_lea.vmem [#allocation10], %s521_s10 }
  0x5b   : > { %863 = dma.done.wait (%p1189_p6), %s183_s15, 2048  }
  0x5c   : > { %865 = vsyncadd (%p1189_p6), %s183_s15, 4294965248  ;;  %p207_p11 = scmp.lt.s32.totalorder %s956_s0, 1  ;;  %p1190_p9 = scmp.ne.s32.totalorder %s956_s0, 0 }
  0x5d   : > { %s214_s18 = sld [smem:[#allocation6]] (!%p1190_p9)  ;;  %s528_s12 = sld [smem:[#allocation6 + $0x1]] (!%p1190_p9)  ;;  %vm278_vm0 = vcmask (!%p1190_p9), 7168   ;;  %v892_v0 = vmov (!%p1190_p9), -inf   ;;  %v893_v1 = vmov (!%p1190_p9), 0.0  }
  0x5e   : > { %s1077_s9 = scalar_select %p207_p11, %s956_s0, 1 }
  0x5f   : > { %213 = sbr.rel (%p1190_p9) target bundleno = 123 (0x7b), region = 44  ;;  %279 = vst.msk [vmem:[#allocation3] sm:$0xff] (!%p1190_p9), %vm278_vm0, %v892_v0  ;;  %280 = vst.msk [vmem:[#allocation4] sm:$0xff] (!%p1190_p9), %vm278_vm0, %v893_v1  ;;  %s534_s8 = sld [smem:[#allocation6 + $0x2]] (!%p1190_p9) }
  0x60   : > { %s209_s16 = scalar_lea.vmem %s1174_s3, %s1077_s9  ;;  %s1085_s19 = sld [smem:[#allocation6 + $0x3]] (!%p1190_p9) }
  0x61   : > { %s1087_s11 = sld [smem:[#allocation6 + $0x4]] (!%p1190_p9)  ;;  %s1089_s14 = sld [smem:[#allocation6 + $0x5]] (!%p1190_p9) }
  0x62   : > { %s1091_s20 = sld [smem:[#allocation6 + $0x6]] (!%p1190_p9)  ;;  %s1093_s21 = sld [smem:[#allocation6 + $0x7]] (!%p1190_p9) }
  0x63   : > { %p215_p10 = scmp.gt.s32.totalorder (!%p1190_p9), %s214_s18, 0  ;;  %p523_p7 = scmp.lt.s32.totalorder (!%p1190_p9), %s214_s18, 255 }
  0x64   : > { %p223_p0 = scmp.gt.s32.totalorder (!%p1190_p9), %s528_s12, 0  ;;  %p529_p2 = scmp.lt.s32.totalorder (!%p1190_p9), %s528_s12, 255 }
  0x65   : > { %p231_p8 = scmp.gt.s32.totalorder (!%p1190_p9), %s534_s8, 0  ;;  %p535_p13 = scmp.lt.s32.totalorder (!%p1190_p9), %s534_s8, 255 }
  0x66   : > { %s1196_s18 = smov (!%p215_p10, %s214_s18), 0  ;;  %s1198_s12 = smov (!%p223_p0, %s528_s12), 0 }
  0x67   : > { %s1200_s18 = smov (!%p523_p7, %s1196_s18), 255  ;;  %s1202_s12 = smov (!%p529_p2, %s1198_s12), 255 }
  0x68   : > { %s219_s22 = scalar_lea.vmem [#allocation7], %s1200_s18  ;;  %s227_s13 = scalar_lea.vmem [#allocation7], %s1202_s12 }
  0x69   : > { %v220_v2 = vld [vmem:[%s219_s22] sm:$0x1]  ;;  %s1204_s8 = smov (!%p231_p8, %s534_s8), 0  ;;  %p239_p3 = scmp.gt.s32.totalorder %s1085_s19, 0 }
  0x6a   : > { %221 = vst [vmem:[#allocation2] sm:$0x1] %v220_v2  ;;  %v228_v3 = vld [vmem:[%s227_s13] sm:$0x1]  ;;  %p541_p4 = scmp.lt.s32.totalorder %s1085_s19, 255  ;;  %s1206_s8 = smov (!%p535_p13, %s1204_s8), 255 }
  0x6b   : > { %229 = vst [vmem:[#allocation2 + $0x1] sm:$0x1] %v228_v3  ;;  %s1208_s19 = smov (!%p239_p3, %s1085_s19), 0  ;;  %p247_p12 = scmp.gt.s32.totalorder %s1087_s11, 0 }
  0x6c   : > { %s235_s23 = scalar_lea.vmem [#allocation7], %s1206_s8  ;;  %s1210_s19 = smov (!%p541_p4, %s1208_s19), 255 }
  0x6d   : > { %v236_v4 = vld [vmem:[%s235_s23] sm:$0x1]  ;;  %s248_s28 = scalar_select %p247_p12, %s1087_s11, 0 }
  0x6e   : > { %237 = vst [vmem:[#allocation2 + $0x2] sm:$0x1] %v236_v4  ;;  %p547_p1 = scmp.lt.s32.totalorder %s1087_s11, 255  ;;  %s243_s30 = scalar_lea.vmem [#allocation7], %s1210_s19 }
  0x6f   : > { %v244_v5 = vld [vmem:[%s243_s30] sm:$0x1]  ;;  %p255_p5 = scmp.gt.s32.totalorder %s1089_s14, 0  ;;  %p553_p6 = scmp.lt.s32.totalorder %s1089_s14, 255 }
  0x70   : > { %245 = vst [vmem:[#allocation2 + $0x3] sm:$0x1] %v244_v5  ;;  %s1212_s28 = smov (!%p547_p1, %s248_s28), 255  ;;  %p263_p11 = scmp.gt.s32.totalorder %s1091_s20, 0 }
  0x71   : > { %s1214_s14 = smov (!%p255_p5, %s1089_s14), 0  ;;  %s251_s5 = scalar_lea.vmem [#allocation7], %s1212_s28 }
  0x72   : > { %v252_v6 = vld [vmem:[%s251_s5] sm:$0x1]  ;;  %s1216_s14 = smov (!%p553_p6, %s1214_s14), 255  ;;  %p559_p9 = scmp.lt.s32.totalorder %s1091_s20, 255 }
  0x73   : > { %253 = vst [vmem:[#allocation2 + $0x4] sm:$0x1] %v252_v6  ;;  %s264_s7 = scalar_select %p263_p11, %s1091_s20, 0 }
  0x74   : > { %s259_s10 = scalar_lea.vmem [#allocation7], %s1216_s14  ;;  %p271_p10 = scmp.gt.s32.totalorder %s1093_s21, 0 }
  0x75   : > { %v260_v7 = vld [vmem:[%s259_s10] sm:$0x1]  ;;  %p565_p7 = scmp.lt.s32.totalorder %s1093_s21, 255  ;;  %s1218_s7 = smov (!%p559_p9, %s264_s7), 255 }
  0x76   : > { %261 = vst [vmem:[#allocation2 + $0x5] sm:$0x1] %v260_v7  ;;  %s1220_s21 = smov (!%p271_p10, %s1093_s21), 0  ;;  %s267_s15 = scalar_lea.vmem [#allocation7], %s1218_s7 }
  0x77   : > { %v268_v8 = vld [vmem:[%s267_s15] sm:$0x1]  ;;  %s1222_s21 = smov (!%p565_p7, %s1220_s21), 255 }
  0x78   : > { %269 = vst [vmem:[#allocation2 + $0x6] sm:$0x1] %v268_v8  ;;  %s275_s24 = scalar_lea.vmem [#allocation7], %s1222_s21 }
  0x79   : > { %v276_v9 = vld [vmem:[%s275_s24] sm:$0x1] }
  0x7a   : > { %277 = vst [vmem:[#allocation2 + $0x7] sm:$0x1] %v276_v9 }
  0x7b PF: > { %v283_v10 = vld [vmem:[%s1069_s17] sm:$0xff]  ;;  %v284_v11 = vld [vmem:[%s1069_s17 + $0x8] sm:$0xff]  ;;  %v285_v12 = vld [vmem:[%s1069_s17 + $0x10] sm:$0xff]  ;;  %v894_v13 = vmov 0.0|0.0   ;;  %vm895_vm1 = vmmov 0   ;;  %v896_v16 = vmov 0.0  }
  0x7c   : > { %646 = vmatprep.subr.bf16.mxu0 %v894_v13  ;;  %v647_v14 = vpack.c.bf16 %v284_v11, %v283_v10  ;;  %v286_v15 = vld [vmem:[%s1069_s17 + $0x18] sm:$0xff]  ;;  %643 = vmatprep.mubr.msk.f32.mxu0 %vm895_vm1, %v896_v16  ;;  %v287_v18 = vld [vmem:[%s1069_s17 + $0x20] sm:$0xff]  ;;  %v288_v19 = vld [vmem:[%s1069_s17 + $0x28] sm:$0xff]  ;;  %s571_s25 = sshll.u32 %s956_s0, 7  ;;  %v897_v41 = vmov 0   ;;  %vm396_vm2 = vcmask 7168  }
  0x7d   : > { %v650_v17 = vpack.c.bf16 %v286_v15, %v285_v12  ;;  %v653_v20 = vpack.c.bf16 %v288_v19, %v287_v18  ;;  %v289_v21 = vld [vmem:[%s1069_s17 + $0x30] sm:$0xff]  ;;  %v290_v22 = vld [vmem:[%s1069_s17 + $0x38] sm:$0xff]  ;;  %v291_v24 = vld [vmem:[%s1069_s17 + $0x40] sm:$0xff]  ;;  %s400_s18 = sshra.s32 %s571_s25, 7  ;;  %738 = vset.pattern.permute.xlu0 %v897_v41  ;;  %p573_p0 = scmp.ne.s32.totalorder %s956_s0, 1 }
  0x7e   : > { %648 = vmatpush3.bf16.msra.mxu0 %v647_v14  ;;  %v656_v23 = vpack.c.bf16 %v290_v22, %v289_v21  ;;  %v292_v25 = vld [vmem:[%s1069_s17 + $0x48] sm:$0xff]  ;;  %v293_v27 = vld [vmem:[%s1069_s17 + $0x50] sm:$0xff]  ;;  %v294_v28 = vld [vmem:[%s1069_s17 + $0x58] sm:$0xff]  ;;  %s572_s12 = sshll.u32 %s400_s18, 3  ;;  %v898_v57 = vmov (!%p573_p0), 0  }
  0x7f   : > { %649 = vmatprep.subr.bf16.mxu0 %v894_v13  ;;  %v659_v26 = vpack.c.bf16 %v292_v25, %v291_v24  ;;  %v662_v29 = vpack.c.bf16 %v294_v28, %v293_v27  ;;  %v295_v30 = vld [vmem:[%s1069_s17 + $0x60] sm:$0xff]  ;;  %v296_v31 = vld [vmem:[%s1069_s17 + $0x68] sm:$0xff]  ;;  %v297_v33 = vld [vmem:[%s1069_s17 + $0x70] sm:$0xff]  ;;  %s403_s11 = scalar_lea.vmem [#allocation12], %s572_s12 }
  0x80   : > { %v665_v32 = vpack.c.bf16 %v296_v31, %v295_v30  ;;  %v298_v34 = vld [vmem:[%s1069_s17 + $0x78] sm:$0xff]  ;;  %v570_v37 = vld [vmem:[%s209_s16] ss:$0 sm:$0xff]  ;;  %v376_v42 = vld [vmem:[#allocation3] sm:$0xff] }
  0x81   : > { %v668_v35 = vpack.c.bf16 %v298_v34, %v297_v33  ;;  %v282_v36 = vld [vmem:[#allocation2] sm:$0xff]  ;;  %v380_v52 = vld [vmem:[#allocation4] sm:$0xff] }
  0x82   : > { %651 = vmatpush3.bf16.msra.mxu0 %v650_v17 }
  0x83   : > { %652 = vmatprep.subr.bf16.mxu0 %v894_v13 }
  0x86   : > { %654 = vmatpush3.bf16.msra.mxu0 %v653_v20 }
  0x87   : > { %655 = vmatprep.subr.bf16.mxu0 %v894_v13 }
  0x8a   : > { %657 = vmatpush3.bf16.msra.mxu0 %v656_v23 }
  0x8b   : > { %658 = vmatprep.subr.bf16.mxu0 %v894_v13 }
  0x8e   : > { %660 = vmatpush3.bf16.msra.mxu0 %v659_v26 }
  0x8f   : > { %661 = vmatprep.subr.bf16.mxu0 %v894_v13 }
  0x92   : > { %663 = vmatpush3.bf16.msra.mxu0 %v662_v29 }
  0x93   : > { %664 = vmatprep.subr.bf16.mxu0 %v894_v13 }
  0x96   : > { %666 = vmatpush3.bf16.msra.mxu0 %v665_v32 }
  0x97   : > { %667 = vmatprep.subr.bf16.mxu0 %v894_v13 }
  0x9a   : > { %669 = vmatpush3.bf16.msra.mxu0 %v668_v35 }
  0x9d   : > { %644 = vmatmul.mubr.f32.vlgmr.msra.gmra.mrb[0].mxu0 %v282_v36 }
 0x170   : > { %v365_v38 = vpop.f32.mrb[0].mxu0 }
 0x171   : > { %v375_v39 = vadd.f32 %v570_v37, %v365_v38  ;;  %v645_v40 = vpop.f32.mrb[1].mxu0 }
 0x173   : > { %404 = vst [vmem:[%s403_s11] sm:$0xff] %v375_v39  ;;  %377 = vmax.xlane.f32.xlu0 %v375_v39 }
 0x17a   : > { %v414_v62 = vld [vmem:[#allocation12] sm:$0xff] (!%p573_p0)  ;;  %v415_v63 = vld [vmem:[#allocation12 + $0x8] sm:$0xff] (!%p573_p0) }
 0x200   : > { %v378_v43 = vpop.xlane.xlu0 %377 }
 0x201   : > { %v379_v44 = vmax.f32 %v376_v42, %v378_v43 }
 0x203   : > { %v381_v45 = vsub.f32 %v376_v42, %v379_v44  ;;  %398 = vst.msk [vmem:[#allocation3] sm:$0xff] %vm396_vm2, %v379_v44  ;;  %387 = vperm.xlu0 %738, %v379_v44  }
 0x205   : > { %v382_v50 = vmul.f32 1.442695, %v381_v45 }
 0x207   : > { %743 = vset.pattern.permute.xlu0 (!%p573_p0), %v898_v57 }
 0x20a   : > { %v409_v59 = vld [vmem:[#allocation3] sm:$0xff] (!%p573_p0) }
 0x282   : > { %v388_v46 = vpop.permute.xlu0 %387 }
 0x283   : > { %v390_v47 = vsub.f32 %v375_v39, %v388_v46 }
 0x285   : > { %v391_v48 = vmul.f32 1.442695, %v390_v47 }
 0x287   : > { %739 = vpow2.f32 %v391_v48 }
 0x288   : > { %741 = vpow2.f32 %v382_v50 }
 0x291   : > { %v740_v49 = vpop.eup %739 }
 0x292   : > { %393 = vadd.xlane.f32.xlu1 %v740_v49  ;;  %v742_v51 = vpop.eup %741 }
 0x293   : > { %v384_v53 = vmul.f32 %v742_v51, %v380_v52 }
 0x31c   : > { %408 = sbr.rel (%p573_p0) target bundleno = 956 (0x3bc), region = 48 }
 0x31f   : > { %v394_v54 = vpop.xlane.xlu1 %393 }
 0x320   : > { %v395_v55 = vadd.f32 %v394_v54, %v384_v53 }
 0x322   : > { %397 = vst.msk [vmem:[#allocation4] sm:$0xff] %vm396_vm2, %v395_v55 }
 0x329   : > { %v410_v56 = vld [vmem:[#allocation4] sm:$0xff] }
 0x32a   : > { %744 = vlog2.f32 %v410_v56 }
 0x334   : > { %v745_v58 = vpop.eup %744 }
 0x335   : > { %v412_v60 = vmul.f32 0.6931472, %v745_v58 }
 0x337   : > { %v413_v61 = vadd.f32 %v412_v60, %v409_v59 }
 0x339   : > { %418 = vperm.xlu0 %743, %v413_v61  }
 0x3b8   : > { %v419_v0 = vpop.permute.xlu0 %418 }
 0x3b9   : > { %v421_v1 = vsub.f32 %v414_v62, %v419_v0  ;;  %v422_v2 = vsub.f32 %v415_v63, %v419_v0 }
 0x3bb   : > { %423 = vst [vmem:[#allocation12] sm:$0xff] %v421_v1  ;;  %424 = vst [vmem:[#allocation12 + $0x8] sm:$0xff] %v422_v2 }
 0x3bc PF: > { %p691_p2 = scmp.eq.s32.totalorder %s956_s0, 1  ;;  %s899_s17 = smov [#allocation12]  }
 0x3bd   : > { %s432_s9 = sshll.u32 %s899_s17, 4  ;;  %s433_s9 = int_to_ptr.vmem [resolvable:$true] %s432_s9 }
 0x3be   : > { %s814_s16 = scalar_lea.vmem %s433_s9, 256  ;;  %p821_p4 = scmp.lt.s32.totalorder %s433_s9, %s433_s9 }
 0x3bf   : > { %p815_p8 = scmp.ne.s32.totalorder %s433_s9, %s814_s16  ;;  %p822_p12 = scmp.lt.s32.totalorder %s814_s16, %s814_s16 }
 0x3c1   : > { %p816_p13 = pnand %p815_p8, %p691_p2  ;;  %p823_p1 = por %p822_p12, %p821_p4 }
 0x3c3   : > { %p817_p3 = pneg %p816_p13 }
 0x3c5   : > { %p824_p5 = pnand %p823_p1, %p817_p3 }
 0x3c7   : > { %827 = shalt.err (!%p824_p5)
}
 0x3c8   : > { %s828_s21 = scalar_lea.hbm %s1175_s4, 256 }
 0x3c9   : > { %p829_p6 = scmp.ne.s32.totalorder %s1175_s4, %s828_s21  ;;  %p834_p10 = scmp.lt.u32.totalorder %s828_s21, %s1175_s4 }
 0x3cb   : > { %p830_p11 = pnand %p829_p6, %p691_p2 }
 0x3cd   : > { %p831_p9 = pneg %p830_p11 }
 0x3cf   : > { %p836_p7 = pnand %p834_p10, %p831_p9 }
 0x3d1   : > { %839 = shalt.err (!%p836_p7)
}
 0x3d2   : > { %677 = dma.vmem_to_hbm [thread:$0]  (%p691_p2), %s433_s9, 256, %s1175_s4, [#allocation9]  }
 0x3d3   : > { %867 = dma.done.wait (%p691_p2), [#allocation9], 256  }
 0x3d4   : > { %869 = vsyncadd (%p691_p2), [#allocation9], 4294967040 }
 0x3d5 PF: > { %p20_p0 = scmp.ge.s32.totalorder %s959_s29, 4   ;;  %s1191_s25 = smov %s876_s26 }
 0x3d6   : > { %s1192_s26 = smov %s880_s27  ;;  %s1193_s27 = smov %s969_s6 }
 0x3d7   : > { %s1194_s28 = smov %s959_s29  ;;  %22 = sbr.rel (!%p20_p0) target bundleno = 17 (0x11), region = 94 }
 0x3de   :  { %445 = vsyncpa [#allocation8], 1 }
 0x3df   :  { %447 = vsyncpa [#allocation8 + $0x1], 1 }
 0x3e0   :  { %448 = vsyncpa [#allocation11], 1 }
 0x3e1   :  { %450 = vsyncpa [#allocation11 + $0x1], 1 }
 0x3e2   :  { %451 = vsyncpa [#allocation9], 1 }
 0x3e3   :  { %453 = vsyncpa [#allocation9 + $0x1], 1 }

</bundles_post_ra>
